<compile_context>
chip_gen: v7x
topology: tpu7x:2x2x1
jax: 0.10.0
libtpu: 0.0.40
codegen_flags: <defaults>
</compile_context>

<pallas_src>
import math

import jax
import jax.numpy as jnp
from jax import lax
from jax.experimental import pallas as pl
from jax.experimental.pallas import tpu as pltpu


def _prod(xs):
    out = 1
    for v in xs:
        out *= int(v)
    return out


def _round_up(x, m):
    return ((x + m - 1) // m) * m


# --------------------------------------------------------------------------
# Prologue: fused theta/phi/g 1x1 projections, computed once per element.
# --------------------------------------------------------------------------
def _make_proj_kernel(ci):
    def kernel(x_ref, w_ref, b_ref, th_ref, ph_ref, g_ref):
        xb = x_ref[0].astype(w_ref.dtype)                              # (C, T)
        proj = (jnp.dot(w_ref[...], xb, preferred_element_type=jnp.float32)
                + b_ref[...])                                          # (3Ci, T) f32
        th_ref[0] = proj[:ci, :].astype(th_ref.dtype)
        ph_ref[0] = proj[ci:2 * ci, :].astype(ph_ref.dtype)
        g_ref[0] = proj[2 * ci:, :].astype(g_ref.dtype)
    return kernel


# --------------------------------------------------------------------------
# Main attention kernel: flash-style online softmax + W_z + residual.
# --------------------------------------------------------------------------
def _make_attn_kernel(tile_k, s_valid, mask_keys, approx_recip, return_y):
    def kernel(th_ref, ph_ref, g_ref, xq_ref, wz_ref, bz_ref, *outs_scratch):
        if return_y:
            z_ref, y_ref = outs_scratch[0], outs_scratch[1]
            m_s, l_s, acc_s = outs_scratch[2:]
        else:
            z_ref = outs_scratch[0]
            y_ref = None
            m_s, l_s, acc_s = outs_scratch[1:]

        ki = pl.program_id(2)
        nk = pl.num_programs(2)

        @pl.when(ki == 0)
        def _init():
            m_s[...] = jnp.full(m_s.shape, -jnp.inf, jnp.float32)
            l_s[...] = jnp.zeros(l_s.shape, jnp.float32)
            acc_s[...] = jnp.zeros(acc_s.shape, jnp.float32)

        # Scores: theta/phi are channel-first (Ci, T) -> contract axis 0.
        # No in-kernel transposes; theta tile stays resident across ki
        # (its block index does not depend on the key axis).
        f = lax.dot_general(th_ref[0], ph_ref[0], (((0,), (0,)), ((), ())),
                            preferred_element_type=jnp.float32)        # (TQ, TK)
        if mask_keys:
            key_idx = ki * tile_k + lax.broadcasted_iota(jnp.int32, f.shape, 1)
            f = jnp.where(key_idx < s_valid, f, -1e30)

        # Online softmax, f32 throughout.
        m_prev = m_s[...]
        m_new = jnp.maximum(m_prev, jnp.max(f, axis=-1, keepdims=True))
        alpha = jnp.exp(m_prev - m_new)
        p = jnp.exp(f - m_new)
        l_s[...] = alpha * l_s[...] + jnp.sum(p, axis=-1, keepdims=True)
        acc_s[...] = alpha * acc_s[...] + lax.dot_general(
            p.astype(g_ref.dtype), g_ref[0], (((1,), (1,)), ((), ())),
            preferred_element_type=jnp.float32)                        # (TQ, Ci)
        m_s[...] = m_new

        @pl.when(ki == nk - 1)
        def _finalize():
            if approx_recip:
                inv_l = pl.reciprocal(l_s[...], approx=True)
            else:
                inv_l = 1.0 / l_s[...]
            y = acc_s[...] * inv_l                                     # (TQ, Ci) f32
            # W_z (BatchNorm folded in) back to C channels, channel-first.
            w_y = (lax.dot_general(wz_ref[...], y.astype(wz_ref.dtype),
                                   (((1,), (1,)), ((), ())),
                                   preferred_element_type=jnp.float32)
                   + bz_ref[...])                                      # (C, TQ)
            z_ref[0] = (xq_ref[0] + w_y).astype(z_ref.dtype)           # residual
            if return_y:
                y_ref[0] = y.astype(y_ref.dtype)                       # (TQ, Ci)

    return kernel


def nlblock_forward(x_nchw, params, *, mxu_dtype=jnp.bfloat16, return_y=False,
                    tile_q=256, tile_k=256, vmem_limit_bytes=64 * 1024 * 1024):
    """Forward of NLBlockND (embedded mode).  x_nchw: (N, C, *spatial) f32.

    Returns z (same shape as x), plus the intermediate y if return_y=True.
    """
    N, C = x_nchw.shape[:2]
    spatial = x_nchw.shape[2:]
    S = _prod(spatial)
    Ci = params["theta_w"].shape[1]

    # Channel-first, lane-dense layout: pure reshape, no transpose.
    x = x_nchw.reshape(N, C, S).astype(jnp.float32)

    # Tiles are multiples of 128 (lane-dense unmasked stores), capped at the
    # 128-aligned spatial extent; S is padded so every tile is full and tail
    # keys are masked in-kernel.
    s128 = _round_up(S, 128)
    TQ = min(_round_up(max(tile_q, 128), 128), s128)
    TK = min(_round_up(max(tile_k, 128), 128), s128)
    S_pad = _round_up(S, math.lcm(TQ, TK))
    nq, nk = S_pad // TQ, S_pad // TK
    mask_keys = S_pad != S

    if S_pad != S:
        x = jnp.pad(x, ((0, 0), (0, 0), (0, S_pad - S)))

    # ---- prologue: theta/phi/g projections once per element -----------------
    w_all = jnp.concatenate(
        [params["theta_w"].T, params["phi_w"].T, params["g_w"].T],
        axis=0).astype(mxu_dtype)                                      # (3Ci, C)
    b_all = jnp.concatenate(
        [params["theta_b"].T, params["phi_b"].T, params["g_b"].T],
        axis=0).astype(jnp.float32)                                    # (3Ci, 1)

    TP = TK
    proj_grid = pltpu.PrefetchScalarGridSpec(
        num_scalar_prefetch=0,
        grid=(N, S_pad // TP),
        in_specs=[
            pl.BlockSpec((1, C, TP), lambda b, s: (b, 0, s)),
            pl.BlockSpec((3 * Ci, C), lambda b, s: (0, 0)),
            pl.BlockSpec((3 * Ci, 1), lambda b, s: (0, 0)),
        ],
        out_specs=tuple(pl.BlockSpec((1, Ci, TP), lambda b, s: (b, 0, s))
                        for _ in range(3)),
    )
    theta, phi, g = pl.pallas_call(
        _make_proj_kernel(Ci),
        out_shape=tuple(jax.ShapeDtypeStruct((N, Ci, S_pad), mxu_dtype)
                        for _ in range(3)),
        grid_spec=proj_grid,
        compiler_params=pltpu.CompilerParams(
            dimension_semantics=("parallel", "parallel"),
            vmem_limit_bytes=vmem_limit_bytes,
        ),
    )(x, w_all, b_all)

    # ---- main attention + W_z + residual kernel ------------------------------
    # Fold the eval-mode BatchNorm affine into the W_z 1x1 conv (exact).
    wz = (params["wz_w"] * params["bn_scale"]).T.astype(mxu_dtype)     # (C, Ci)
    bz = (params["wz_b"] * params["bn_scale"]
          + params["bn_shift"]).T.astype(jnp.float32)                  # (C, 1)

    in_specs = [
        pl.BlockSpec((1, Ci, TQ), lambda b, qi, ki: (b, 0, qi)),   # theta (query)
        pl.BlockSpec((1, Ci, TK), lambda b, qi, ki: (b, 0, ki)),   # phi   (key)
        pl.BlockSpec((1, Ci, TK), lambda b, qi, ki: (b, 0, ki)),   # g     (key)
        pl.BlockSpec((1, C, TQ), lambda b, qi, ki: (b, 0, qi)),    # x (residual)
        pl.BlockSpec((C, Ci), lambda b, qi, ki: (0, 0)),           # W_z (folded)
        pl.BlockSpec((C, 1), lambda b, qi, ki: (0, 0)),            # b_z (folded)
    ]
    out_specs = [pl.BlockSpec((1, C, TQ), lambda b, qi, ki: (b, 0, qi))]
    out_shape = [jax.ShapeDtypeStruct((N, C, S_pad), jnp.float32)]
    if return_y:  # debug path only
        out_specs.append(pl.BlockSpec((1, TQ, Ci), lambda b, qi, ki: (b, qi, 0)))
        out_shape.append(jax.ShapeDtypeStruct((N, S_pad, Ci), jnp.float32))

    scratch_shapes = [
        pltpu.VMEM((TQ, 1), jnp.float32),    # running max
        pltpu.VMEM((TQ, 1), jnp.float32),    # running sum
        pltpu.VMEM((TQ, Ci), jnp.float32),   # y accumulator
    ]

    grid_spec = pltpu.PrefetchScalarGridSpec(
        num_scalar_prefetch=0,
        grid=(N, nq, nk),
        in_specs=in_specs,
        out_specs=tuple(out_specs),
        scratch_shapes=scratch_shapes,
    )

    kernel = _make_attn_kernel(TK, S, mask_keys,
                               mxu_dtype != jnp.float32, return_y)

    outs = pl.pallas_call(
        kernel,
        out_shape=tuple(out_shape),
        grid_spec=grid_spec,
        compiler_params=pltpu.CompilerParams(
            dimension_semantics=("parallel", "parallel", "arbitrary"),
            vmem_limit_bytes=vmem_limit_bytes,
        ),
    )(theta, phi, g, x, wz, bz)

    z = outs[0][:, :, :S].reshape((N, C) + spatial)
    if return_y:
        y = jnp.transpose(outs[1][:, :S, :], (0, 2, 1)).reshape((N, Ci) + spatial)
        return z, y
    return z


# --------------------------------------------------------------------------
# Pure-JAX reference of the PyTorch forward (embedded mode).
# --------------------------------------------------------------------------
def ref_forward(x_nchw, params):
    N, C = x_nchw.shape[:2]
    spatial = x_nchw.shape[2:]
    S = _prod(spatial)
    Ci = params["theta_w"].shape[1]
    x = jnp.transpose(x_nchw.reshape(N, C, S), (0, 2, 1))              # (N,S,C)
    g_x = x @ params["g_w"] + params["g_b"]                            # (N,S,Ci)
    th = x @ params["theta_w"] + params["theta_b"]
    ph = x @ params["phi_w"] + params["phi_b"]
    f = jnp.einsum("nsc,ntc->nst", th, ph)
    f_div_c = jax.nn.softmax(f, axis=-1)
    y = jnp.einsum("nst,ntc->nsc", f_div_c, g_x)                       # (N,S,Ci)
    w_y = y @ params["wz_w"] + params["wz_b"]
    w_y = w_y * params["bn_scale"] + params["bn_shift"]
    z = w_y + x
    z_nchw = jnp.transpose(z, (0, 2, 1)).reshape((N, C) + spatial)
    y_nchw = jnp.transpose(y, (0, 2, 1)).reshape((N, Ci) + spatial)
    return z_nchw, y_nchw


def make_params(key, in_channels, inter_channels):
    """Deterministic parameter init mirroring NLBlockND.__init__ shapes.
    Conv weights stored as (in, out) so x(...,in) @ W(in,out)."""
    C, Ci = in_channels, inter_channels
    ks = jax.random.split(key, 8)
    scale = 0.1
    p = {
        "g_w":     scale * jax.random.normal(ks[0], (C, Ci), jnp.float32),
        "g_b":     scale * jax.random.normal(ks[1], (1, Ci), jnp.float32),
        "theta_w": scale * jax.random.normal(ks[2], (C, Ci), jnp.float32),
        "theta_b": scale * jax.random.normal(ks[3], (1, Ci), jnp.float32),
        "phi_w":   scale * jax.random.normal(ks[4], (C, Ci), jnp.float32),
        "phi_b":   scale * jax.random.normal(ks[5], (1, Ci), jnp.float32),
        "wz_w":    scale * jax.random.normal(ks[6], (Ci, C), jnp.float32),
        "wz_b":    scale * jax.random.normal(ks[7], (1, C), jnp.float32),
    }
    # BatchNorm zero-init per the module (weight=0, bias=0), eval-mode stats
    # (running_mean=0, running_var=1, eps=1e-5) folded to a per-channel affine.
    gamma = jnp.zeros((1, C), jnp.float32)
    beta = jnp.zeros((1, C), jnp.float32)
    running_mean = jnp.zeros((1, C), jnp.float32)
    running_var = jnp.ones((1, C), jnp.float32)
    eps = 1e-5
    bn_scale = gamma / jnp.sqrt(running_var + eps)
    bn_shift = beta - running_mean * bn_scale
    p["bn_scale"] = bn_scale
    p["bn_shift"] = bn_shift
    return p


if __name__ == "__main__":
    # Module config: NLBlockND(in_channels=4, mode='embedded', dimension=2)
    # -> inter_channels = 4 // 2 = 2.
    N, C, H, W = 2, 4, 16, 16       # S = 256
    Ci = C // 2

    key = jax.random.PRNGKey(0)
    kx, kp, kbn1, kbn2, kx2 = jax.random.split(key, 5)
    x = jax.random.normal(kx, (N, C, H, W), jnp.float32)
    params = make_params(kp, C, Ci)

    z_ref, y_ref = ref_forward(x, params)

    # --- f32 verification path, multi-tile (128) exercise of online softmax --
    z32, y32 = nlblock_forward(x, params, mxu_dtype=jnp.float32, return_y=True,
                               tile_q=128, tile_k=128)
    z32 = jax.block_until_ready(z32)
    y32 = jax.block_until_ready(y32)
    assert z32.shape == (N, C, H, W)
    assert y32.shape == (N, Ci, H, W)
    assert jnp.allclose(z32, z_ref, atol=1e-4, rtol=1e-4)
    assert jnp.allclose(y32, y_ref, atol=1e-4, rtol=1e-4)
    # With zero-initialized BN (per the module), the block is identity at init.
    assert jnp.allclose(z32, x, atol=1e-5, rtol=1e-5)

    # --- production path: bf16 MXU operands, default 256 tiles, no y ---------
    z = nlblock_forward(x, params)                  # default mxu_dtype=bfloat16
    z = jax.block_until_ready(z)
    assert z.shape == (N, C, H, W)
    assert jnp.allclose(z, x, atol=1e-5, rtol=1e-5)   # exact identity at init
    _, y16 = nlblock_forward(x, params, return_y=True)
    y16 = jax.block_until_ready(y16)
    assert jnp.allclose(y16, y_ref, atol=2e-2, rtol=2e-2)

    # --- non-zero BN affine: exercises the W_z + folded-BN + residual path ---
    params_bn = dict(params)
    params_bn["bn_scale"] = 1.0 + 0.1 * jax.random.normal(kbn1, (1, C), jnp.float32)
    params_bn["bn_shift"] = 0.1 * jax.random.normal(kbn2, (1, C), jnp.float32)
    z_bn_ref, _ = ref_forward(x, params_bn)
    z_bn = nlblock_forward(x, params_bn, mxu_dtype=jnp.float32,
                           tile_q=128, tile_k=128)
    z_bn = jax.block_until_ready(z_bn)
    assert jnp.allclose(z_bn, z_bn_ref, atol=1e-4, rtol=1e-4)

    # --- non-divisible S: H=W=14 -> S=196, padded to 256, tail keys masked ---
    x2 = jax.random.normal(kx2, (1, C, 14, 14), jnp.float32)
    z2_ref, y2_ref = ref_forward(x2, params_bn)
    z2, y2 = nlblock_forward(x2, params_bn, mxu_dtype=jnp.float32, return_y=True,
                             tile_q=128, tile_k=128)
    z2 = jax.block_until_ready(z2)
    assert z2.shape == (1, C, 14, 14)
    assert jnp.allclose(z2, z2_ref, atol=1e-4, rtol=1e-4)
    assert jnp.allclose(y2, y2_ref, atol=1e-4, rtol=1e-4)

    print("KERNEL_OK")
</pallas_src>

<mosaic_0001>
module attributes {stable_mosaic.version = 11 : i64} {
  func.func @kernel(%arg0: i32, %arg1: i32, %arg2: memref<1x4x128xf32, #tpu.memory_space<vmem>>, %arg3: memref<6x4xf32, #tpu.memory_space<vmem>>, %arg4: memref<6x1xf32, #tpu.memory_space<vmem>>, %arg5: memref<1x2x128xf32, #tpu.memory_space<vmem>>, %arg6: memref<1x2x128xf32, #tpu.memory_space<vmem>>, %arg7: memref<1x2x128xf32, #tpu.memory_space<vmem>>) attributes {dimension_semantics = [#tpu.dimension_semantics<parallel>, #tpu.dimension_semantics<parallel>], iteration_bounds = array<i64: 2, 2>, scalar_prefetch = 0 : i64, scratch_operands = 0 : i64, tpu.core_type = #tpu.core_type<tc>, window_params = [{transform_indices = @transform_0, window_bounds = array<i64: 1, 4, 128>}, {pipeline_mode = #tpu.pipeline_mode<synchronous>, transform_indices = @transform_1, window_bounds = array<i64: 6, 4>}, {pipeline_mode = #tpu.pipeline_mode<synchronous>, transform_indices = @transform_2, window_bounds = array<i64: 6, 1>}, {transform_indices = @transform_3, window_bounds = array<i64: 1, 2, 128>}, {transform_indices = @transform_4, window_bounds = array<i64: 1, 2, 128>}, {transform_indices = @transform_5, window_bounds = array<i64: 1, 2, 128>}]} {
    %c0 = arith.constant 0 : index
    %c0_0 = arith.constant 0 : index
    %c0_1 = arith.constant 0 : index
    %0 = vector.load %arg2[%c0, %c0_0, %c0_1] : memref<1x4x128xf32, #tpu.memory_space<vmem>>, vector<1x4x128xf32>
    %1 = vector.shape_cast %0 : vector<1x4x128xf32> to vector<4x128xf32>
    %c0_2 = arith.constant 0 : index
    %c0_3 = arith.constant 0 : index
    %2 = vector.load %arg3[%c0_2, %c0_3] : memref<6x4xf32, #tpu.memory_space<vmem>>, vector<6x4xf32>
    %cst = arith.constant dense<0.000000e+00> : vector<6x128xf32>
    %3 = tpu.matmul %2, %1, %cst {dimension_numbers = #tpu.dot_dimension_numbers<[1], [0], [0], [1], [0, 0, 1, 1], [], []>} : vector<6x4xf32>, vector<4x128xf32>, vector<6x128xf32> -> vector<6x128xf32>
    %c0_4 = arith.constant 0 : index
    %c0_5 = arith.constant 0 : index
    %4 = vector.load %arg4[%c0_4, %c0_5] : memref<6x1xf32, #tpu.memory_space<vmem>>, vector<6x1xf32>
    %5 = vector.broadcast %4 : vector<6x1xf32> to vector<6x128xf32>
    %6 = arith.addf %3, %5 : vector<6x128xf32>
    %7 = vector.extract_strided_slice %6 {offsets = [0, 0], sizes = [2, 128], strides = [1, 1]} : vector<6x128xf32> to vector<2x128xf32>
    %c0_6 = arith.constant 0 : index
    %c0_7 = arith.constant 0 : index
    %c0_8 = arith.constant 0 : index
    %8 = vector.load %arg5[%c0_6, %c0_7, %c0_8] : memref<1x2x128xf32, #tpu.memory_space<vmem>>, vector<1x2x128xf32>
    %9 = vector.shape_cast %8 : vector<1x2x128xf32> to vector<2x128xf32>
    %10 = vector.shape_cast %7 : vector<2x128xf32> to vector<1x2x128xf32>
    tpu.vector_store %arg5[%c0_6, %c0_7, %c0_8], %10 {strides = array<i32>} : memref<1x2x128xf32, #tpu.memory_space<vmem>>, vector<1x2x128xf32>,
    %11 = vector.extract_strided_slice %6 {offsets = [2, 0], sizes = [2, 128], strides = [1, 1]} : vector<6x128xf32> to vector<2x128xf32>
    %c0_9 = arith.constant 0 : index
    %c0_10 = arith.constant 0 : index
    %c0_11 = arith.constant 0 : index
    %12 = vector.load %arg6[%c0_9, %c0_10, %c0_11] : memref<1x2x128xf32, #tpu.memory_space<vmem>>, vector<1x2x128xf32>
    %13 = vector.shape_cast %12 : vector<1x2x128xf32> to vector<2x128xf32>
    %14 = vector.shape_cast %11 : vector<2x128xf32> to vector<1x2x128xf32>
    tpu.vector_store %arg6[%c0_9, %c0_10, %c0_11], %14 {strides = array<i32>} : memref<1x2x128xf32, #tpu.memory_space<vmem>>, vector<1x2x128xf32>,
    %15 = vector.extract_strided_slice %6 {offsets = [4, 0], sizes = [2, 128], strides = [1, 1]} : vector<6x128xf32> to vector<2x128xf32>
    %c0_12 = arith.constant 0 : index
    %c0_13 = arith.constant 0 : index
    %c0_14 = arith.constant 0 : index
    %16 = vector.load %arg7[%c0_12, %c0_13, %c0_14] : memref<1x2x128xf32, #tpu.memory_space<vmem>>, vector<1x2x128xf32>
    %17 = vector.shape_cast %16 : vector<1x2x128xf32> to vector<2x128xf32>
    %18 = vector.shape_cast %15 : vector<2x128xf32> to vector<1x2x128xf32>
    tpu.vector_store %arg7[%c0_12, %c0_13, %c0_14], %18 {strides = array<i32>} : memref<1x2x128xf32, #tpu.memory_space<vmem>>, vector<1x2x128xf32>,
    return
  }
  func.func @transform_0(%arg0: i32, %arg1: i32) -> (i32, i32, i32) {
    %c0_i32 = arith.constant 0 : i32
    %c0_i32_0 = arith.constant 0 : i32
    return %arg0, %c0_i32, %arg1 : i32, i32, i32
  }
  func.func @transform_1(%arg0: i32, %arg1: i32) -> (i32, i32) {
    %c0_i32 = arith.constant 0 : i32
    %c0_i32_0 = arith.constant 0 : i32
    %c0_i32_1 = arith.constant 0 : i32
    return %c0_i32, %c0_i32_0 : i32, i32
  }
  func.func @transform_2(%arg0: i32, %arg1: i32) -> (i32, i32) {
    %c0_i32 = arith.constant 0 : i32
    %c0_i32_0 = arith.constant 0 : i32
    %c0_i32_1 = arith.constant 0 : i32
    return %c0_i32, %c0_i32_0 : i32, i32
  }
  func.func @transform_3(%arg0: i32, %arg1: i32) -> (i32, i32, i32) {
    %c0_i32 = arith.constant 0 : i32
    %c0_i32_0 = arith.constant 0 : i32
    return %arg0, %c0_i32, %arg1 : i32, i32, i32
  }
  func.func @transform_4(%arg0: i32, %arg1: i32) -> (i32, i32, i32) {
    %c0_i32 = arith.constant 0 : i32
    %c0_i32_0 = arith.constant 0 : i32
    return %arg0, %c0_i32, %arg1 : i32, i32, i32
  }
  func.func @transform_5(%arg0: i32, %arg1: i32) -> (i32, i32, i32) {
    %c0_i32 = arith.constant 0 : i32
    %c0_i32_0 = arith.constant 0 : i32
    return %arg0, %c0_i32, %arg1 : i32, i32, i32
  }
}

</mosaic_0001>

<bundles_post_ra>
// kernel: tpu_custom_call.1
= control target key start
LH: loop header
LB: loop body
LE: loop exit
PB: predicated region body
PF: predicated region fallthrough
CT: control target
= control target key end

     0   :  { %s1388_s0 = inlined_call_operand.hbm [shape: f32[2,4,256], index: 0, kind: input, shape index: {}]   ;;  %s1389_s1 = inlined_call_operand.hbm [shape: f32[6,4], index: 1, kind: input, shape index: {}]   ;;  %s1390_s2 = inlined_call_operand.hbm [shape: f32[6,1], index: 2, kind: input, shape index: {}]   ;;  %s1391_s3 = inlined_call_operand.hbm [shape: f32[2,2,256], index: 3, kind: output, shape index: {0}]   ;;  %s1392_s4 = inlined_call_operand.hbm [shape: f32[2,2,256], index: 4, kind: output, shape index: {1}]   ;;  %s1393_s5 = inlined_call_operand.hbm [shape: f32[2,2,256], index: 5, kind: output, shape index: {2}]  }
   0x1   :  { %1402 = sst [smem:[#allocation19_spill]] %s1389_s1 }
   0x2   :  { %1403 = sst [smem:[#allocation20_spill]] %s1390_s2 }
   0x3   :  { %1404 = sst [smem:[#allocation21_spill]] %s1393_s5 }
   0x4   :  { %11 = vsyncpa [#allocation3], 0 }
   0x5   :  { %13 = vsyncpa [#allocation3 + $0x1], 0 }
   0x6   :  { %14 = vsyncpa [#allocation6], 0 }
   0x7   :  { %15 = vsyncpa [#allocation4], 0 }
   0x8   :  { %17 = vsyncpa [#allocation4 + $0x1], 0 }
   0x9   :  { %18 = vsyncpa [#allocation10], 0 }
   0xa   :  { %20 = vsyncpa [#allocation10 + $0x1], 0  ;;  %s1057_s18 = smov 0   ;;  %s1059_s19 = smov 0  }
   0xb   :  { %s1061_s20 = smov 0   ;;  %s1063_s21 = smov 0  }
   0xc   :  { %s1065_s22 = smov 0   ;;  %s1067_s23 = smov 0  }
   0xd   :  { %s1069_s24 = smov 0   ;;  %s1071_s25 = smov 0  }
   0xe LB: > { %1405 = sst [smem:[#allocation16_spill]] %s988_s18  ;;  %s1098_s26 = sadd.s32 4294967295, %s1016_s25   ;;  %s1016_s25 = sphi %s1071_s25, %s26_s25   ;;  %s1012_s24 = sphi %s1069_s24, %s1433_s24   ;;  %s1008_s23 = sphi %s1067_s23, %s1432_s23   ;;  %s1004_s22 = sphi %s1065_s22, %s1431_s22   ;;  %s1000_s21 = sphi %s1063_s21, %s1430_s21   ;;  %s996_s20 = sphi %s1061_s20, %s1429_s20   ;;  %s992_s19 = sphi %s1059_s19, %s1428_s19   ;;  %s988_s18 = sphi %s1057_s18, %s1427_s18  }
   0xf   : > { %s1397_s27 = sadd.s32 4294967294, %s1016_s25   ;;  %p60_p0 = scmp.ne.s32.totalorder %s992_s19, %s988_s18 }
  0x10   : > { %p1394_p1 = scmp.eq.s32.totalorder %s1098_s26, 0  ;;  %p134_p2 = scmp.eq.s32.totalorder %s1397_s27, 3 }
  0x11   : > { %p621_p4 = scmp.ge.s32.totalorder %s1016_s25, 1  ;;  %p197_p6 = scmp.lt.s32.totalorder %s1016_s25, 5 }
  0x12   : > { %p1108_p3 = por %p1394_p1, %p60_p0  ;;  %p1113_p5 = por %p134_p2, %p60_p0 }
  0x13   : > { %p1118_p7 = pnand %p621_p4, %p197_p6  ;;  %s1018_s6 = smov [#allocation5]  }
  0x14   : > { %s1406_s28 = scalar_select %p1108_p3, 1, 0 }
  0x15   : > { %s1407_s29 = scalar_select %p1113_p5, 1, 0 }
  0x16   : > { %s1409_s30 = scalar_select %p1118_p7, 1, 0 }
  0x17   : > { %1408 = sst [smem:[#allocation17_spill]] %s1407_s29  ;;  %s210_s7 = sshll.u32 %s1018_s6, 4  ;;  %s211_s7 = int_to_ptr.vmem [resolvable:$true] %s210_s7 }
  0x18   : > { %p671_p8 = pneg %p1118_p7  ;;  %s1019_s8 = smov [#allocation7]  }
  0x19   : > { %s221_s9 = sshll.u32 %s1019_s8, 4  ;;  %s1411_s1 = sld [smem:[#allocation19_spill]]  ;;  %s1130_s9 = int_to_ptr.vmem [resolvable:$true] %s221_s9 }
  0x1a   : > { %p1126_p9 = pnand %p671_p8, %p1394_p1 }
  0x1c   : > { %p770_p11 = pneg %p1126_p9 }
  0x1f   : > { %s768_s13 = scalar_lea.hbm %s1411_s1, 128 }
  0x20   : > { %p769_p10 = scmp.ne.s32.totalorder %s1411_s1, %s768_s13  ;;  %p775_p0 = scmp.lt.u32.totalorder %s768_s13, %s1411_s1 }
  0x22   : > { %p771_p12 = pnand %p770_p11, %p769_p10 }
  0x24   : > { %p772_p13 = pneg %p771_p12 }
  0x26   : > { %p777_p2 = pnand %p775_p0, %p772_p13 }
  0x28   : > { %780 = shalt.err (!%p777_p2)
}
  0x29   : > { %s781_s6 = scalar_lea.vmem %s211_s7, 128  ;;  %p789_p1 = scmp.lt.s32.totalorder %s211_s7, %s211_s7 }
  0x2a   : > { %p782_p4 = scmp.ne.s32.totalorder %s211_s7, %s781_s6  ;;  %p790_p5 = scmp.lt.s32.totalorder %s781_s6, %s781_s6 }
  0x2c   : > { %p784_p6 = pnand %p782_p4, %p770_p11  ;;  %p791_p3 = por %p790_p5, %p789_p1 }
  0x2e   : > { %p785_p8 = pneg %p784_p6 }
  0x30   : > { %p792_p7 = pnand %p791_p3, %p785_p8 }
  0x32   : > { %795 = shalt.err (!%p792_p7)
}
  0x33   : > { %674 = dma.hbm_to_vmem [thread:$0]  (!%p1126_p9), %s1411_s1, 128, %s211_s7, [#allocation6]  }
  0x34   : > { %s1412_s2 = sld [smem:[#allocation20_spill]] }
  0x3a   : > { %s796_s14 = scalar_lea.hbm %s1412_s2, 128 }
  0x3b   : > { %p797_p10 = scmp.ne.s32.totalorder %s1412_s2, %s796_s14  ;;  %p803_p5 = scmp.lt.u32.totalorder %s796_s14, %s1412_s2 }
  0x3d   : > { %p799_p1 = pnand %p797_p10, %p770_p11 }
  0x3f   : > { %p800_p3 = pneg %p799_p1 }
  0x41   : > { %p805_p7 = pnand %p803_p5, %p800_p3 }
  0x43   : > { %808 = shalt.err (!%p805_p7)
}
  0x44   : > { %s809_s7 = scalar_lea.vmem %s1130_s9, 128  ;;  %p817_p2 = scmp.lt.s32.totalorder %s1130_s9, %s1130_s9 }
  0x45   : > { %p810_p12 = scmp.ne.s32.totalorder %s1130_s9, %s809_s7  ;;  %p818_p4 = scmp.lt.s32.totalorder %s809_s7, %s809_s7 }
  0x47   : > { %p812_p13 = pnand %p810_p12, %p770_p11  ;;  %p819_p6 = por %p818_p4, %p817_p2 }
  0x49   : > { %p813_p0 = pneg %p812_p13 }
  0x4b   : > { %p820_p8 = pnand %p819_p6, %p813_p0 }
  0x4d   : > { %823 = shalt.err (!%p820_p8)
}
  0x4e   : > { %677 = dma.hbm_to_vmem [thread:$0]  (!%p1126_p9), %s1412_s2, 128, %s1130_s9, [#allocation6]  }
  0x4f   : > { %p128_p11 = scmp.eq.s32.totalorder %s1098_s26, 3  ;;  %s35_s12 = sadd.s32 1, %s1008_s23 }
  0x50   : > { %p36_p10 = scmp.ge.s32.totalorder %s35_s12, 2  ;;  %s38_s10 = sadd.s32 1, %s1012_s24 }
  0x51   : > { %p54_p1 = scmp.ne.s32.totalorder %s996_s20, %s992_s19  ;;  %p55_p3 = scmp.eq.s32.totalorder %s1016_s25, 0 }
  0x52   : > { %s1435_s12 = smov (%p36_p10, %s35_s12), 0  ;;  %s1437_s10 = smov (!%p36_p10, %s38_s10), %s1012_s24 }
  0x53   : > { %1413 = sst [smem:[#allocation18_spill]] %s1435_s12  ;;  %s43_s13 = ssub.s32 %s1008_s23, %s1435_s12 }
  0x54   : > { %s47_s14 = sadd.s32 1, %s996_s20  ;;  %p40_p5 = scmp.ge.s32.totalorder %s1437_s10, 2 }
  0x55   : > { %p1191_p7 = por %p128_p11, %p54_p1  ;;  %p1195_p9 = por %p55_p3, %p54_p1 }
  0x56   : > { %s232_s16 = sand.u32 1, %s996_s20   ;;  %s1439_s10 = smov (%p40_p5, %s1437_s10), 0 }
  0x57   : > { %p694_p12 = scmp.lt.s32.totalorder %s1016_s25, 4  ;;  %s625_s17 = sshll.u32 %s232_s16, 2 }
  0x58   : > { %s42_s6 = ssub.s32 %s1012_s24, %s1439_s10  ;;  %s626_s8 = sshll.u32 %s1012_s24, 1 }
  0x59   : > { %s44_s7 = sor.u32 %s43_s13, %s42_s6  ;;  %s241_s11 = sadd.s32 %s1008_s23, %s626_s8 }
  0x5a   : > { %p45_p13 = scmp.eq.s32.totalorder %s44_s7, 0  ;;  %s627_s27 = sshll.u32 %s241_s11, 6 }
  0x5b   : > { %s236_s1 = scalar_lea.vmem [#allocation2], %s625_s17  ;;  %s1213_s5 = scalar_lea.hbm %s1388_s0, %s627_s27 }
  0x5c   : > { %s245_s2 = sshll.u32 %s236_s1, 4  ;;  %p1221_p0 = pnand %p694_p12, %p1195_p9  ;;  %s1215_s2 = int_to_ptr.vmem [resolvable:$true] %s245_s2 }
  0x5d   : > { %s1208_s12 = scalar_select %p45_p13, %s996_s20, %s47_s14  }
  0x5e   : > { %s233_s1 = scalar_lea.sflag [#allocation3], %s232_s16  ;;  %s824_s14 = scalar_lea.hbm %s1213_s5, 64 }
  0x5f   : > { %p825_p2 = scmp.ne.s32.totalorder %s1213_s5, %s824_s14  ;;  %p826_p4 = pneg %p1221_p0 }
  0x60   : > { %s829_s29 = scalar_lea.hbm %s1388_s0, 256  ;;  %p830_p11 = scmp.lt.u32.totalorder %s1213_s5, %s1388_s0 }
  0x61   : > { %p827_p6 = pnand %p826_p4, %p825_p2  ;;  %p831_p10 = scmp.lt.u32.totalorder %s829_s29, %s824_s14 }
  0x62   : > { %p833_p3 = scmp.lt.u32.totalorder %s824_s14, %s1213_s5 }
  0x63   : > { %p828_p8 = pneg %p827_p6  ;;  %p832_p1 = por %p831_p10, %p830_p11 }
  0x65   : > { %p834_p5 = por %p833_p3, %p832_p1 }
  0x67   : > { %p835_p9 = pnand %p834_p5, %p828_p8 }
  0x69   : > { %838 = shalt.err (!%p835_p9)
}
  0x6a   : > { %s839_s16 = scalar_lea.vmem %s1215_s2, 64  ;;  %s1020_s6 = smov [#allocation2]  }
  0x6b   : > { %p840_p12 = scmp.ne.s32.totalorder %s1215_s2, %s839_s16  ;;  %s844_s7 = sshll.u32 %s1020_s6, 4  ;;  %s845_s7 = int_to_ptr.vmem [resolvable:$false] %s844_s7 }
  0x6c   : > { %s846_s8 = scalar_lea.vmem %s845_s7, 128  ;;  %p847_p6 = scmp.lt.s32.totalorder %s1215_s2, %s845_s7 }
  0x6d   : > { %p842_p13 = pnand %p840_p12, %p826_p4  ;;  %p848_p11 = scmp.lt.s32.totalorder %s846_s8, %s839_s16 }
  0x6f   : > { %p843_p2 = pneg %p842_p13  ;;  %p849_p10 = por %p848_p11, %p847_p6 }
  0x71   : > { %p850_p1 = pnand %p849_p10, %p843_p2 }
  0x73   : > { %853 = shalt.err (!%p850_p1)
}
  0x74   : > { %681 = dma.hbm_to_vmem [thread:$0]  (!%p1221_p0), %s1213_s5, 64, %s1215_s2, %s233_s1  }
  0x75   : > { %p1417_p8 = scmp.ne.s32.totalorder %s1409_s30, 0 }
  0x76   : > { %s1253_s11 = sand.u32 (!%p1417_p8), 1, %s992_s19   ;;  %p1418_p4 = scmp.ne.s32.totalorder (!%p1417_p8), %s1406_s28, 0 }
  0x77   : > { %254 = sbr.rel (%p1417_p8) target bundleno = 412 (0x19c), region = 32  ;;  %s629_s14 = sshll.u32 (!%p1417_p8), %s1253_s11, 2 }
  0x78   : > { %s257_s18 = scalar_lea.sflag (!%p1417_p8), [#allocation3], %s1253_s11  ;;  %s260_s27 = scalar_lea.vmem (!%p1417_p8), [#allocation2], %s629_s14 }
  0x7e   : > { %971 = dma.done.wait (%p1418_p4), %s257_s18, 64  }
  0x7f   : > { %973 = vsyncadd (%p1418_p4), %s257_s18, 4294967232  ;;  %p1419_p3 = scmp.eq.s32.totalorder %s1098_s26, 0 }
  0x81   : > { %975 = dma.done.wait (%p1419_p3), [#allocation6], 256   ;;  %p1420_p0 = pmov %p1419_p3 }
  0x82   : > { %v1021_v0 = vmov 0.0   ;;  %vm1022_vm0 = vmmov 0   ;;  %v1023_v1 = vmov 0   ;;  %vm317_vm1 = vcmask 1043456   ;;  %v305_v2 = vld [vmem:[%s260_s27] sm:$0xf] }
  0x83   : > { %977 = vsyncadd (%p1420_p0), [#allocation6], 4294967040  ;;  %650 = vmatprep.subr.mxu0 %v1021_v0  ;;  %652 = vmatprep.mubr.msk.f32.mxu0 %vm1022_vm0, %v1021_v0  ;;  %vm313_vm2 = vcmask 31744   ;;  %v306_v3 = vld [vmem:[#allocation5] sm:$0x3f]  ;;  %s640_s2 = sshll.u32 %s1004_s22, 1 }
  0x84   : > { %767 = vset.pattern.permute.xlu0 %v1023_v1  ;;  %v307_v4 = vld [vmem:[#allocation7] sm:$0x3f]  ;;  %651 = vmatpush3.msk.msra.mxu0 %vm317_vm1, %v305_v2  ;;  %s632_s5 = sshll.u32 %s1253_s11, 1  ;;  %s416_s28 = sadd.s32 %s1000_s21, %s640_s2 }
  0x85   : > { %310 = vperm.xlu0 %767, %v307_v4   ;;  %653 = vmatmul.mubr.msk.f32.vlgmr.msra.gmra.mrb[0].mxu0 %vm313_vm2, %v306_v3  ;;  %s399_s30 = sand.u32 1, %s1098_s26   ;;  %s641_s13 = sshll.u32 %s416_s28, 5 }
  0x86   : > { %s297_s1 = scalar_lea.vmem [#allocation9], %s632_s5  ;;  %s304_s15 = scalar_lea.vmem [#allocation11], %s632_s5 }
  0x87   : > { %s435_s29 = sshll.u32 %s297_s1, 4  ;;  %s450_s17 = sshll.u32 %s304_s15, 4  ;;  %s1274_s29 = int_to_ptr.vmem [resolvable:$true] %s435_s29  ;;  %s1288_s17 = int_to_ptr.vmem [resolvable:$true] %s450_s17 }
  0x88   : > { %s290_s16 = scalar_lea.vmem [#allocation8], %s632_s5  ;;  %s1272_s14 = scalar_lea.hbm %s1392_s4, %s641_s13 }
  0x89   : > { %s420_s6 = sshll.u32 %s290_s16, 4  ;;  %s1279_s26 = scalar_lea.hbm %s1391_s3, %s641_s13  ;;  %s1281_s6 = int_to_ptr.vmem [resolvable:$true] %s420_s6 }
  0x8a   : > { %s1421_s2 = sld [smem:[#allocation21_spill]]  ;;  %s1290_s28 = scalar_lea.sflag [#allocation10], %s399_s30 }
  0x8b   : > { %s854_s7 = scalar_lea.vmem %s1274_s29, 32  ;;  %s1024_s8 = smov [#allocation9]  }
  0x8c   : > { %p855_p5 = scmp.ne.s32.totalorder %s1274_s29, %s854_s7  ;;  %s858_s21 = sshll.u32 %s1024_s8, 4  ;;  %s859_s21 = int_to_ptr.vmem [resolvable:$false] %s858_s21 }
  0x8d   : > { %p861_p13 = scmp.lt.s32.totalorder %s1274_s29, %s859_s21 }
  0x8e   : > { %p856_p9 = pnand %p855_p5, %p1191_p7 }
  0x90   : > { %s1286_s5 = scalar_lea.hbm %s1421_s2, %s641_s13  ;;  %p857_p12 = pneg %p856_p9 }
 0x104   : > { %v311_v5 = vpop.permute.xlu0 %310 }
 0x158   : > { %v387_v6 = vpop.f32.mrb[0].mxu0 }
 0x159   : > { %v388_v7 = vadd.f32 %v387_v6, %v311_v5  ;;  %v654_v8 = vpop.f32.mrb[1].mxu0 }
 0x15b   : > { %391 = vst [vmem:[%s290_s16] sm:$0x3] %v388_v7  ;;  %392 = vst [vmem:[%s297_s1 - $0x2] sm:$0xc] %v388_v7  ;;  %s860_s16 = scalar_lea.vmem %s859_s21, 64 }
 0x15c   : > { %393 = vst [vmem:[%s304_s15 - $0x4] sm:$0x30] %v388_v7  ;;  %p862_p2 = scmp.lt.s32.totalorder %s860_s16, %s854_s7 }
 0x15e   : > { %p863_p6 = por %p862_p2, %p861_p13 }
 0x160   : > { %p864_p11 = pnand %p863_p6, %p857_p12 }
 0x162   : > { %867 = shalt.err (!%p864_p11)
}
 0x163   : > { %s868_s30 = scalar_lea.hbm %s1272_s14, 32  ;;  %s872_s15 = scalar_lea.hbm %s1392_s4, 128 }
 0x164   : > { %p869_p10 = scmp.ne.s32.totalorder %s1272_s14, %s868_s30  ;;  %p873_p4 = scmp.lt.u32.totalorder %s1272_s14, %s1392_s4 }
 0x165   : > { %p874_p3 = scmp.lt.u32.totalorder %s872_s15, %s868_s30  ;;  %p876_p5 = scmp.lt.u32.totalorder %s868_s30, %s1272_s14 }
 0x166   : > { %p870_p1 = pnand %p869_p10, %p1191_p7 }
 0x167   : > { %p875_p0 = por %p874_p3, %p873_p4 }
 0x168   : > { %p871_p8 = pneg %p870_p1 }
 0x169   : > { %p877_p9 = por %p876_p5, %p875_p0 }
 0x16b   : > { %p878_p12 = pnand %p877_p9, %p871_p8 }
 0x16d   : > { %881 = shalt.err (!%p878_p12)
}
 0x16e   : > { %666 = dma.vmem_to_hbm [thread:$0]  (%p1191_p7), %s1274_s29, 32, %s1272_s14, %s1290_s28  }
 0x16f   : > { %s395_s27 = scalar_lea.sflag [#allocation4], %s1253_s11  ;;  %s882_s7 = scalar_lea.vmem %s1281_s6, 32 }
 0x170   : > { %p883_p13 = scmp.ne.s32.totalorder %s1281_s6, %s882_s7  ;;  %s1025_s8 = smov [#allocation8]  }
 0x171   : > { %s886_s21 = sshll.u32 %s1025_s8, 4  ;;  %s887_s21 = int_to_ptr.vmem [resolvable:$false] %s886_s21 }
 0x172   : > { %p884_p2 = pnand %p883_p13, %p1191_p7  ;;  %s888_s16 = scalar_lea.vmem %s887_s21, 64 }
 0x173   : > { %p889_p11 = scmp.lt.s32.totalorder %s1281_s6, %s887_s21  ;;  %p890_p10 = scmp.lt.s32.totalorder %s888_s16, %s882_s7 }
 0x174   : > { %p885_p6 = pneg %p884_p2 }
 0x175   : > { %p891_p1 = por %p890_p10, %p889_p11 }
 0x177   : > { %p892_p8 = pnand %p891_p1, %p885_p6 }
 0x179   : > { %895 = shalt.err (!%p892_p8)
}
 0x17a   : > { %s896_s11 = scalar_lea.hbm %s1279_s26, 32  ;;  %s900_s30 = scalar_lea.hbm %s1391_s3, 128 }
 0x17b   : > { %p897_p4 = scmp.ne.s32.totalorder %s1279_s26, %s896_s11  ;;  %p901_p5 = scmp.lt.u32.totalorder %s1279_s26, %s1391_s3 }
 0x17c   : > { %p902_p9 = scmp.lt.u32.totalorder %s900_s30, %s896_s11  ;;  %p904_p13 = scmp.lt.u32.totalorder %s896_s11, %s1279_s26 }
 0x17d   : > { %p898_p3 = pnand %p897_p4, %p1191_p7 }
 0x17e   : > { %p903_p12 = por %p902_p9, %p901_p5 }
 0x17f   : > { %p899_p0 = pneg %p898_p3 }
 0x180   : > { %p905_p2 = por %p904_p13, %p903_p12 }
 0x182   : > { %p906_p6 = pnand %p905_p2, %p899_p0 }
 0x184   : > { %909 = shalt.err (!%p906_p6)
}
 0x185   : > { %665 = dma.vmem_to_hbm [thread:$0]  (%p1191_p7), %s1281_s6, 32, %s1279_s26, %s395_s27  }
 0x186   : > { %s910_s15 = scalar_lea.vmem %s1288_s17, 32  ;;  %s1026_s22 = smov [#allocation11]  }
 0x187   : > { %p911_p11 = scmp.ne.s32.totalorder %s1288_s17, %s910_s15  ;;  %s914_s18 = sshll.u32 %s1026_s22, 4  ;;  %s915_s18 = int_to_ptr.vmem [resolvable:$false] %s914_s18 }
 0x188   : > { %s916_s7 = scalar_lea.vmem %s915_s18, 64  ;;  %p917_p8 = scmp.lt.s32.totalorder %s1288_s17, %s915_s18 }
 0x189   : > { %p912_p10 = pnand %p911_p11, %p1191_p7  ;;  %p918_p4 = scmp.lt.s32.totalorder %s916_s7, %s910_s15 }
 0x18b   : > { %p913_p1 = pneg %p912_p10  ;;  %p919_p3 = por %p918_p4, %p917_p8 }
 0x18d   : > { %p920_p0 = pnand %p919_p3, %p913_p1 }
 0x18f   : > { %923 = shalt.err (!%p920_p0)
}
 0x190   : > { %s924_s6 = scalar_lea.hbm %s1286_s5, 32  ;;  %s928_s8 = scalar_lea.hbm %s1421_s2, 128 }
 0x191   : > { %p925_p5 = scmp.ne.s32.totalorder %s1286_s5, %s924_s6  ;;  %p929_p13 = scmp.lt.u32.totalorder %s1286_s5, %s1421_s2 }
 0x192   : > { %p930_p2 = scmp.lt.u32.totalorder %s928_s8, %s924_s6  ;;  %p932_p11 = scmp.lt.u32.totalorder %s924_s6, %s1286_s5 }
 0x193   : > { %p926_p9 = pnand %p925_p5, %p1191_p7 }
 0x194   : > { %p931_p6 = por %p930_p2, %p929_p13 }
 0x195   : > { %p927_p12 = pneg %p926_p9 }
 0x196   : > { %p933_p10 = por %p932_p11, %p931_p6 }
 0x198   : > { %p934_p1 = pnand %p933_p10, %p927_p12 }
 0x19a   : > { %937 = shalt.err (!%p934_p1)
}
 0x19b   : > { %667 = dma.vmem_to_hbm [thread:$0]  (%p1191_p7), %s1288_s17, 32, %s1286_s5, %s1290_s28  }
 0x19c PF: > { %s1422_s11 = sld [smem:[#allocation16_spill]]  ;;  %s1423_s29 = sld [smem:[#allocation17_spill]] }
 0x19d   : > { %p697_p8 = scmp.ge.s32.totalorder %s1016_s25, 2 }
 0x1a2   : > { %s462_s14 = sand.u32 1, %s1422_s11   ;;  %p1424_p4 = scmp.ne.s32.totalorder %s1423_s29, 0 }
 0x1a3   : > { %s463_s30 = scalar_lea.sflag [#allocation4], %s462_s14 }
 0x1a4   : > { %p683_p3 = pnand %p697_p8, %p1424_p4 }
 0x1a6   : > { %979 = dma.done.wait (!%p683_p3), %s463_s30, 32  }
 0x1a7   : > { %981 = vsyncadd (!%p683_p3), %s463_s30, 4294967264  ;;  %s1425_s13 = sadd.s32 4294967294, %s1016_s25  }
 0x1a8   : > { %s471_s1 = sand.u32 1, %s1425_s13  }
 0x1a9   : > { %s472_s15 = scalar_lea.sflag [#allocation10], %s471_s1 }
 0x1aa   : > { %983 = dma.done.wait (!%p683_p3), %s472_s15, 64  }
 0x1ab   : > { %985 = vsyncadd (!%p683_p3), %s472_s15, 4294967232  ;;  %s26_s25 = sadd.s32 1, %s1016_s25   ;;  %s1426_s9 = sld [smem:[#allocation18_spill]] }
 0x1ac   : > { %p23_p7 = scmp.ge.s32.totalorder %s26_s25, 6   ;;  %s1427_s18 = smov %s992_s19 }
 0x1ad   : > { %s1428_s19 = smov %s996_s20  ;;  %s1429_s20 = smov %s1208_s12 }
 0x1ae   : > { %s1430_s21 = smov %s1008_s23  ;;  %s1431_s22 = smov %s1012_s24 }
 0x1af   : > { %s1433_s24 = smov %s1439_s10  ;;  %25 = sbr.rel (!%p23_p7) target bundleno = 14 (0xe), region = 117 }
 0x1b1   : > { %s1432_s23 = smov %s1426_s9 }
 0x1b6   :  { %486 = vsyncpa [#allocation3], 1 }
 0x1b7   :  { %488 = vsyncpa [#allocation3 + $0x1], 1 }
 0x1b8   :  { %489 = vsyncpa [#allocation6], 1 }
 0x1b9   :  { %490 = vsyncpa [#allocation4], 1 }
 0x1ba   :  { %492 = vsyncpa [#allocation4 + $0x1], 1 }
 0x1bb   :  { %493 = vsyncpa [#allocation10], 1 }
 0x1bc   :  { %495 = vsyncpa [#allocation10 + $0x1], 1 }

</bundles_post_ra>
